<compile_context>
chip_gen: v7x
topology: tpu7x:2x2x1
jax: 0.10.0
libtpu: 0.0.40
codegen_flags: <defaults>
</compile_context>

<pallas_src>
import jax
import jax.numpy as jnp
from jax.experimental import pallas as pl
from jax.experimental.pallas import tpu as pltpu

LANES = 128            # vreg lane width
DEFAULT_TILE_M = 1024  # rows per block -> 1024*128*4B = 512 KiB per buffer


def _linear_sigmoid_kernel(wb_ref, x_ref, o_ref):
    # wb_ref: (2,) SMEM scalar-prefetch array holding [w, b].
    # x_ref / o_ref: (tile_m, 128) lane-dense VMEM tiles.
    w = wb_ref[0]
    b = wb_ref[1]
    o_ref[...] = jax.nn.sigmoid(x_ref[...] * w + b)


def _linear_sigmoid_pallas(x, w, b, tile_m=DEFAULT_TILE_M):
    """Kernel path. x: (N, 1) or (N,), w: (1,1), b: (1,). Returns (N, 1) f32."""
    n = x.shape[0]

    # Lane-dense layout: pad N up so it reshapes to (rows_p, 128) with
    # rows_p a multiple of the row tile (all blocks full -> no partial blocks).
    rows = -(-n // LANES)                         # cdiv(n, 128)
    tile_m = min(tile_m, -(-rows // 8) * 8)       # shrink tile for small inputs, keep %8==0
    rows_p = -(-rows // tile_m) * tile_m          # pad rows to a multiple of tile_m
    n_pad = rows_p * LANES

    x_flat = jnp.ravel(x).astype(jnp.float32)
    x_pad = jnp.pad(x_flat, (0, n_pad - n))
    x2 = x_pad.reshape(rows_p, LANES)

    # w, b as SMEM scalars via scalar prefetch.
    wb = jnp.stack(
        [w.reshape(()).astype(jnp.float32), b.reshape(()).astype(jnp.float32)]
    )

    grid = (rows_p // tile_m,)
    out = pl.pallas_call(
        _linear_sigmoid_kernel,
        out_shape=jax.ShapeDtypeStruct((rows_p, LANES), jnp.float32),
        grid_spec=pltpu.PrefetchScalarGridSpec(
            num_scalar_prefetch=1,
            grid=grid,
            in_specs=[pl.BlockSpec((tile_m, LANES), lambda i, wb_ref: (i, 0))],
            out_specs=pl.BlockSpec((tile_m, LANES), lambda i, wb_ref: (i, 0)),
        ),
        compiler_params=pltpu.CompilerParams(
            dimension_semantics=("parallel",),  # megacore sharding on v7x
        ),
    )(wb, x2)

    return out.reshape(-1)[:n].reshape(n, 1)


def linear_sigmoid(x, w, b, *, min_pallas_elems=65536):
    """Forward pass of Model: sigmoid(Linear(1,1)(x)).

    For tiny batches the XLA fused elementwise op is strictly faster than a
    kernel launch, so we only dispatch to Pallas above a size threshold.
    """
    n = x.shape[0]
    if n < min_pallas_elems:
        w_s = w.reshape(1, 1).astype(jnp.float32)
        b_s = b.reshape(1, 1).astype(jnp.float32)
        return jax.nn.sigmoid(x.astype(jnp.float32) * w_s + b_s)
    return _linear_sigmoid_pallas(x, w, b)


if __name__ == "__main__":
    key = jax.random.PRNGKey(0)
    kx1, kx2, kw, kb = jax.random.split(key, 4)

    # Deterministic "parameters" for nn.Linear(1, 1): weight (1,1), bias (1,)
    w = jax.random.normal(kw, (1, 1), dtype=jnp.float32)
    b = jax.random.normal(kb, (1,), dtype=jnp.float32)

    def ref_fn(x):
        return jax.nn.sigmoid(x @ w.T + b)

    # 1) Tiny batch (8, 1): exercises the small-N fast path (pure XLA).
    x_small = jax.random.normal(kx1, (8, 1), dtype=jnp.float32)
    out_small = linear_sigmoid(x_small, w, b)
    jax.block_until_ready(out_small)
    assert out_small.shape == (8, 1)
    assert jnp.allclose(out_small, ref_fn(x_small), atol=1e-6), "small-path mismatch"

    # 2) Modest batch with a ragged size (2053, 1): exercises the Pallas kernel
    #    (lane-dense padding + tiling) by forcing dispatch through the kernel path.
    x_kern = jax.random.normal(kx2, (2053, 1), dtype=jnp.float32)
    out_kern = linear_sigmoid(x_kern, w, b, min_pallas_elems=0)
    jax.block_until_ready(out_kern)
    assert out_kern.shape == (2053, 1)
    assert jnp.allclose(out_kern, ref_fn(x_kern), atol=1e-6), "kernel mismatch"

    print("KERNEL_OK")
</pallas_src>

<mosaic_0001>
module attributes {stable_mosaic.version = 11 : i64} {
  func.func @_linear_sigmoid_kernel(%arg0: i32, %arg1: memref<2xf32, #tpu.memory_space<smem>>, %arg2: memref<24x128xf32, #tpu.memory_space<vmem>>, %arg3: memref<24x128xf32, #tpu.memory_space<vmem>>) attributes {dimension_semantics = [#tpu.dimension_semantics<parallel>], iteration_bounds = array<i64: 1>, scalar_prefetch = 1 : i64, scratch_operands = 0 : i64, tpu.core_type = #tpu.core_type<tc>, window_params = [{transform_indices = @transform_0, window_bounds = array<i64: 24, 128>}, {transform_indices = @transform_1, window_bounds = array<i64: 24, 128>}]} {
    %c0 = arith.constant 0 : index
    %0 = memref.load %arg1[%c0] : memref<2xf32, #tpu.memory_space<smem>>
    %c1 = arith.constant 1 : index
    %1 = memref.load %arg1[%c1] : memref<2xf32, #tpu.memory_space<smem>>
    %c0_0 = arith.constant 0 : index
    %c0_1 = arith.constant 0 : index
    %2 = vector.load %arg2[%c0_0, %c0_1] : memref<24x128xf32, #tpu.memory_space<vmem>>, vector<24x128xf32>
    %3 = vector.broadcast %0 : f32 to vector<24x128xf32>
    %4 = arith.mulf %2, %3 : vector<24x128xf32>
    %5 = vector.broadcast %1 : f32 to vector<24x128xf32>
    %6 = arith.addf %4, %5 : vector<24x128xf32>
    %7 = arith.negf %6 : vector<24x128xf32>
    %8 = math.exp %7 : vector<24x128xf32>
    %cst = arith.constant 1.000000e+00 : f32
    %9 = vector.broadcast %cst : f32 to vector<24x128xf32>
    %10 = arith.addf %9, %8 : vector<24x128xf32>
    %11 = arith.divf %9, %10 : vector<24x128xf32>
    %c0_2 = arith.constant 0 : index
    %c0_3 = arith.constant 0 : index
    %12 = vector.load %arg3[%c0_2, %c0_3] : memref<24x128xf32, #tpu.memory_space<vmem>>, vector<24x128xf32>
    tpu.vector_store %arg3[%c0_2, %c0_3], %11 {strides = array<i32>} : memref<24x128xf32, #tpu.memory_space<vmem>>, vector<24x128xf32>,
    return
  }
  func.func @transform_0(%arg0: i32, %arg1: memref<2xf32, #tpu.memory_space<smem>>) -> (i32, i32) {
    %c0_i32 = arith.constant 0 : i32
    %c0_i32_0 = arith.constant 0 : i32
    return %arg0, %c0_i32 : i32, i32
  }
  func.func @transform_1(%arg0: i32, %arg1: memref<2xf32, #tpu.memory_space<smem>>) -> (i32, i32) {
    %c0_i32 = arith.constant 0 : i32
    %c0_i32_0 = arith.constant 0 : i32
    return %arg0, %c0_i32 : i32, i32
  }
}

</mosaic_0001>

<bundles_post_ra>
// kernel: tpu_custom_call.1
= control target key start
LH: loop header
LB: loop body
LE: loop exit
PB: predicated region body
PF: predicated region fallthrough
CT: control target
= control target key end

     0   :  { %s222_s0 = inlined_call_operand.hbm [shape: f32[2], index: 0, kind: input, shape index: {}]   ;;  %s223_s1 = inlined_call_operand.hbm [shape: f32[24,128], index: 1, kind: input, shape index: {}]   ;;  %s224_s2 = inlined_call_operand.hbm [shape: f32[24,128], index: 2, kind: output, shape index: {}]  }
   0x1   :  { %s100_s11 = scalar_lea.hbm %s222_s0, 16 }
   0x2   :  { %p101_p0 = scmp.ne.s32.totalorder %s222_s0, %s100_s11  ;;  %p104_p1 = scmp.lt.u32.totalorder %s100_s11, %s222_s0 }
   0x4   :  { %p106_p2 = pnand %p104_p1, %p101_p0 }
   0x6   :  { %109 = shalt.err (!%p106_p2)  }
   0x7   :  { %s160_s16 = smov [#allocation3]  }
   0x8   :  { %8 = dma.hbm_to_smem %s222_s0, 16, %s160_s16, [#allocation2] }
   0x9   :  { %154 = dma.done.wait [#allocation2], 16 }
   0xa   :  { %155 = vsyncadd [#allocation2], 4294967280 }
   0xb   :  { %10 = sfence }
   0xc   :  { %11 = vsyncpa [#allocation5], 0 }
   0xd   :  { %12 = vsyncpa [#allocation6], 0  ;;  %s161_s19 = smov [#allocation4]   ;;  %s110_s23 = scalar_lea.hbm %s223_s1, 384 }
   0xe   :  { %s18_s20 = sshll.u32 %s161_s19, 4  ;;  %p111_p3 = scmp.ne.s32.totalorder %s223_s1, %s110_s23  ;;  %s19_s20 = int_to_ptr.vmem [resolvable:$true] %s18_s20 }
   0xf   :  { %p114_p4 = scmp.lt.u32.totalorder %s110_s23, %s223_s1 }
  0x11   :  { %p116_p5 = pnand %p114_p4, %p111_p3 }
  0x13   :  { %119 = shalt.err (!%p116_p5)
}
  0x14   :  { %s120_s0 = scalar_lea.vmem %s19_s20, 384  ;;  %p125_p7 = scmp.lt.s32.totalorder %s19_s20, %s19_s20 }
  0x15   :  { %p121_p6 = scmp.ne.s32.totalorder %s19_s20, %s120_s0  ;;  %p126_p8 = scmp.lt.s32.totalorder %s120_s0, %s120_s0 }
  0x17   :  { %p127_p9 = por %p126_p8, %p125_p7 }
  0x19   :  { %p128_p10 = pnand %p127_p9, %p121_p6 }
  0x1b   :  { %131 = shalt.err (!%p128_p10)
}
  0x1c   :  { %s162_s28 = smov 128   ;;  %s163_s29 = smov 8  }
  0x1d   :  { %24 = dma.hbm_to_vmem [thread:$0]  %s223_s1, 384, %s19_s20, [#allocation5], %s162_s28, %s162_s28, %s163_s29  }
  0x1e   :  { %156 = dma.done.wait [#allocation5], 384  }
  0x1f   :  { %157 = vsyncadd [#allocation5], 4294966912  ;;  %s28_s4 = sld [smem:[#allocation3]]  ;;  %s79_s5 = sld [smem:[#allocation3 + $0x1]]  ;;  %v30_v0 = vld [vmem:[#allocation4] sm:$0xff]  ;;  %v31_v3 = vld [vmem:[#allocation4 + $0x8] sm:$0xff] }
  0x20   :  { %v32_v4 = vld [vmem:[#allocation4 + $0x10] sm:$0xff]  ;;  %s164_s1 = smov [#allocation7]  }
  0x21   :  { %s67_s6 = sshll.u32 %s164_s1, 4  ;;  %s68_s6 = int_to_ptr.vmem [resolvable:$true] %s67_s6 }
  0x22   :  { %s132_s7 = scalar_lea.vmem %s68_s6, 384  ;;  %p137_p12 = scmp.lt.s32.totalorder %s68_s6, %s68_s6 }
  0x23   :  { %p133_p11 = scmp.ne.s32.totalorder %s68_s6, %s132_s7  ;;  %p138_p13 = scmp.lt.s32.totalorder %s132_s7, %s132_s7 }
  0x25   :  { %v33_v1 = vstv %s28_s4  ;;  %v37_v2 = vstv %s79_s5  ;;  %p139_p0 = por %p138_p13, %p137_p12 }
  0x26   :  { %v34_v5 = vmul.f32 %v33_v1, %v30_v0  ;;  %v35_v6 = vmul.f32 %v33_v1, %v31_v3  ;;  %v36_v7 = vmul.f32 %v33_v1, %v32_v4 }
  0x27   :  { %p140_p1 = pnand %p139_p0, %p133_p11 }
  0x28   :  { %v38_v8 = vadd.f32 %v37_v2, %v34_v5  ;;  %v39_v9 = vadd.f32 %v37_v2, %v35_v6  ;;  %v40_v10 = vadd.f32 %v37_v2, %v36_v7 }
  0x2a   :  { %v80_v11 = vmul.f32 -1.442695, %v38_v8  ;;  %v81_v12 = vmul.f32 -1.442695, %v39_v9  ;;  %v82_v13 = vmul.f32 -1.442695, %v40_v10 }
  0x2c   :  { %88 = vpow2.f32 %v80_v11 }
  0x2d   :  { %90 = vpow2.f32 %v81_v12 }
  0x2e   :  { %92 = vpow2.f32 %v82_v13 }
  0x36   :  { %v89_v14 = vpop.eup %88 }
  0x37   :  { %v91_v15 = vpop.eup %90  ;;  %v50_v16 = vadd.f32 1.0, %v89_v14 }
  0x38   :  { %v93_v17 = vpop.eup %92  ;;  %v51_v18 = vadd.f32 1.0, %v91_v15 }
  0x39   :  { %94 = vrcp.f32 %v50_v16  ;;  %v52_v19 = vadd.f32 1.0, %v93_v17 }
  0x3a   :  { %96 = vrcp.f32 %v51_v18 }
  0x3b   :  { %98 = vrcp.f32 %v52_v19 }
  0x43   :  { %v95_v20 = vpop.eup %94 }
  0x44   :  { %v97_v21 = vpop.eup %96  ;;  %59 = vst [vmem:[#allocation7] sm:$0xff] %v95_v20 }
  0x45   :  { %v99_v22 = vpop.eup %98  ;;  %60 = vst [vmem:[#allocation7 + $0x8] sm:$0xff] %v97_v21 }
  0x46   :  { %61 = vst [vmem:[#allocation7 + $0x10] sm:$0xff] %v99_v22 }
  0x47   :  { %143 = shalt.err (!%p140_p1)
}
  0x48   :  { %s144_s10 = scalar_lea.hbm %s224_s2, 384 }
  0x49   :  { %p145_p2 = scmp.ne.s32.totalorder %s224_s2, %s144_s10  ;;  %p148_p3 = scmp.lt.u32.totalorder %s144_s10, %s224_s2 }
  0x4b   :  { %p150_p4 = pnand %p148_p3, %p145_p2 }
  0x4d   :  { %153 = shalt.err (!%p150_p4)
}
  0x4e   :  { %73 = dma.vmem_to_hbm [thread:$0]  %s68_s6, 384, %s224_s2, [#allocation6], %s162_s28, %s162_s28, %s163_s29  }
  0x4f   :  { %158 = dma.done.wait [#allocation6], 384  }
  0x50   :  { %159 = vsyncadd [#allocation6], 4294966912 }
  0x51   :  { %77 = vsyncpa [#allocation5], 1 }
  0x52   :  { %78 = vsyncpa [#allocation6], 1 }

</bundles_post_ra>
